<compile_context>
chip_gen: v5e
topology: v5e:2x2
jax: 0.10.0
libtpu: 0.0.40
codegen_flags: <defaults>
</compile_context>

<pallas_src>
import functools

import jax
import jax.numpy as jnp
from jax import lax
from jax.experimental import pallas as pl
from jax.experimental.pallas import tpu as pltpu

_EPS = 1e-12  # matches F.normalize eps


def _l2_normalize(x):
    # x / max(||x||, eps) == x * rsqrt(max(||x||^2, eps^2)).
    # rsqrt goes to the EUP slot and the divide becomes a multiply.
    norm_sq = jnp.sum(x * x, axis=-1, keepdims=True)
    return x * lax.rsqrt(jnp.maximum(norm_sq, _EPS * _EPS))


def memory_forward_kernel(feat_ref, label_ref, mem_ref,
                          new_mem_ref, loss_ref,
                          featn_ref, class_sum_ref, class_cnt_ref,
                          *, inv_t, inv_b, logits_in_bf16, cache_feat_n):
    p = pl.program_id(0)      # 0: aggregate + memory update, 1: logits + CE
    b = pl.program_id(1)      # batch tile
    nb = pl.num_programs(1)

    num_cls = mem_ref.shape[0]
    tb = feat_ref.shape[0]

    # ---------------- phase 0: class-center aggregation + memory update -----
    @pl.when(p == 0)
    def _phase0():
        @pl.when(b == 0)
        def _init():
            class_sum_ref[...] = jnp.zeros_like(class_sum_ref)
            class_cnt_ref[...] = jnp.zeros_like(class_cnt_ref)

        feat = feat_ref[...].astype(jnp.float32)              # [TB, D]
        feat_n = _l2_normalize(feat)
        if cache_feat_n:
            featn_ref[...] = feat_n

        label = label_ref[...]                                 # [1, TB], -1 = pad
        # One-hot built directly in [C, TB] layout (class on sublanes, batch
        # on lanes): no transpose before the MXU, counts come from a lane
        # reduce.
        cls_iota = lax.broadcasted_iota(jnp.int32, (num_cls, tb), 0)
        onehot = (cls_iota == label).astype(jnp.float32)       # [C, TB]

        # per-class sum of normalized features: [C, TB] @ [TB, D] -> [C, D]
        class_sum_ref[...] += lax.dot_general(
            onehot, feat_n,
            dimension_numbers=(((1,), (0,)), ((), ())),
            preferred_element_type=jnp.float32)
        class_cnt_ref[...] += jnp.sum(onehot, axis=1, keepdims=True)   # [C, 1]

        @pl.when(b == nb - 1)
        def _update_memory():
            mem = mem_ref[...].astype(jnp.float32)                     # [C, D]
            batch_center = _l2_normalize(class_sum_ref[...])           # [C, D]
            flags = (class_cnt_ref[...] > 0.0).astype(jnp.float32)     # [C, 1]
            update_wei = jnp.sum(mem * batch_center, axis=-1, keepdims=True)
            update_wei = 1.0 - (1.0 - update_wei) * flags
            new_mem = update_wei * mem + (1.0 - update_wei) * batch_center
            new_mem_ref[...] = _l2_normalize(new_mem).astype(new_mem_ref.dtype)

    # ---------------- phase 1: logits + softmax cross-entropy ---------------
    @pl.when(p == 1)
    def _phase1():
        new_mem = new_mem_ref[...]                                     # [C, D]

        @pl.when(b == 0)
        def _init_loss():
            # sum_b <feat_n_b, new_mem_{label_b}> == sum_i <new_mem_i, class_sum_i>,
            # so the whole-batch CE target term comes straight from the scratch
            # (computed once, f32, no one-hot / per-row extraction in phase 1).
            tgt_total = jnp.sum(new_mem * class_sum_ref[...], keepdims=True)  # (1,1)
            loss_ref[...] = -inv_t * tgt_total

        if cache_feat_n:
            feat_n = featn_ref[...]
        else:
            feat_n = _l2_normalize(feat_ref[...].astype(jnp.float32))

        if logits_in_bf16:
            simis = lax.dot_general(
                new_mem.astype(jnp.bfloat16), feat_n.astype(jnp.bfloat16),
                dimension_numbers=(((1,), (1,)), ((), ())),
                preferred_element_type=jnp.float32)
        else:
            simis = lax.dot_general(
                new_mem, feat_n,
                dimension_numbers=(((1,), (1,)), ((), ())),
                preferred_element_type=jnp.float32)
        simis = simis * inv_t                                          # [C, TB]

        m = jnp.max(simis, axis=0, keepdims=True)                      # [1, TB]
        lse = m + jnp.log(jnp.sum(jnp.exp(simis - m), axis=0, keepdims=True))
        valid = (label_ref[...] >= 0).astype(jnp.float32)              # [1, TB]
        loss_ref[...] += jnp.sum(lse * valid, axis=1, keepdims=True)

        @pl.when(b == nb - 1)
        def _finalize():
            loss_ref[...] = loss_ref[...] * inv_b


def _round_up(x, m):
    return ((x + m - 1) // m) * m


def memory_forward(feat, label, memory, t=0.1, logits_in_bf16=True):
    """Pallas forward pass of Memory. Returns (loss_scalar, updated_memory)."""
    feat = jnp.asarray(feat, jnp.float32)
    memory = jnp.asarray(memory, jnp.float32)
    B, D = feat.shape
    C, D2 = memory.shape
    assert D == D2, (D, D2)

    # Pad the feature dim to 128 lanes; padded feature columns are zero and
    # drop out of every dot product / norm.
    D_pad = _round_up(D, 128)

    # Batch tile: whole batch in one tile when it fits a modest VMEM budget
    # (fewest grid steps; phase 1 reuses the resident tile and the cached
    # normalized features), otherwise a lane-aligned power-of-two tile.
    whole = _round_up(B, 8)
    if whole * D_pad * 4 <= (8 << 20):
        block_b = whole
    else:
        block_b = 512
        while block_b > 128 and block_b * D_pad * 4 > (4 << 20):
            block_b //= 2
    B_pad = _round_up(B, block_b)
    nb = B_pad // block_b
    cache_feat_n = nb == 1

    # Padded batch rows get label -1 (masked out of the loss / one-hot).
    feat_p = jnp.pad(feat, ((0, B_pad - B), (0, D_pad - D)))
    mem_p = jnp.pad(memory, ((0, 0), (0, D_pad - D)))
    label_row = jnp.full((1, B_pad), -1, dtype=jnp.int32)
    label_row = label_row.at[0, :B].set(jnp.asarray(label, jnp.int32).reshape(-1))

    kernel = functools.partial(
        memory_forward_kernel,
        inv_t=1.0 / float(t),
        inv_b=1.0 / float(B),
        logits_in_bf16=bool(logits_in_bf16),
        cache_feat_n=cache_feat_n,
    )

    # Advisory cost estimate for XLA scheduling around the custom call.
    cost = pl.CostEstimate(
        flops=int(4 * B_pad * C * D_pad + 12 * C * D_pad + 8 * B_pad * D_pad),
        transcendentals=int(B_pad * C + 2 * B_pad + 2 * C),
        bytes_accessed=int(4 * (2 * B_pad * D_pad + 4 * C * D_pad + 3 * B_pad)),
    )

    # Rough VMEM need: double-buffered feat tile + resident memory in/out +
    # class-sum scratch + optional cached normalized features.  Only raise the
    # scoped limit when we exceed the default, staying under v7x's 64 MiB.
    c_pad = _round_up(C, 8)
    featn_rows = block_b if cache_feat_n else 8
    vmem_est = 4 * (2 * block_b * D_pad
                    + 2 * c_pad * D_pad
                    + c_pad * D_pad
                    + featn_rows * D_pad
                    + c_pad * 128) + (1 << 16)
    cp_kwargs = dict(dimension_semantics=("arbitrary", "arbitrary"))
    if vmem_est > (30 << 20):
        cp_kwargs["vmem_limit_bytes"] = int(min(vmem_est * 5 // 4, 60 << 20))

    new_mem_p, loss = pl.pallas_call(
        kernel,
        grid=(2, nb),   # (phase, batch-tile); both carry state -> "arbitrary"
        in_specs=[
            pl.BlockSpec((block_b, D_pad), lambda p, b: (b, 0)),   # feat tile
            pl.BlockSpec((1, block_b), lambda p, b: (0, b)),        # labels
            pl.BlockSpec((C, D_pad), lambda p, b: (0, 0)),          # memory (resident)
        ],
        out_specs=(
            pl.BlockSpec((C, D_pad), lambda p, b: (0, 0)),          # new memory (resident)
            pl.BlockSpec((1, 1), lambda p, b: (0, 0)),              # loss accumulator
        ),
        out_shape=(
            jax.ShapeDtypeStruct((C, D_pad), jnp.float32),
            jax.ShapeDtypeStruct((1, 1), jnp.float32),
        ),
        scratch_shapes=[
            pltpu.VMEM((featn_rows, D_pad), jnp.float32),  # cached normalized feats
            pltpu.VMEM((C, D_pad), jnp.float32),           # per-class feature sums
            pltpu.VMEM((C, 1), jnp.float32),               # per-class counts
        ],
        input_output_aliases={2: 0},                # in-place memory update
        compiler_params=pltpu.CompilerParams(**cp_kwargs),
        cost_estimate=cost,
    )(feat_p, label_row, mem_p)

    return loss[0, 0], new_mem_p[:, :D]


# ---------------- pure-JAX reference (mirrors the PyTorch code) ----------------
def memory_forward_ref(feat, label, memory, t=0.1):
    def l2n(x):
        n = jnp.sqrt(jnp.sum(x * x, axis=-1, keepdims=True))
        return x / jnp.maximum(n, _EPS)

    feat_n = l2n(feat)
    C = memory.shape[0]
    onehot = jax.nn.one_hot(label, C, dtype=jnp.float32)            # [B, C]
    class_sum = onehot.T @ feat_n                                    # [C, D]
    flags = (jnp.sum(onehot, axis=0) > 0).astype(jnp.float32)[:, None]
    batch_center = l2n(class_sum)
    update_wei = jnp.sum(memory * batch_center, axis=-1, keepdims=True)
    update_wei = 1.0 - (1.0 - update_wei) * flags
    new_mem = l2n(update_wei * memory + (1.0 - update_wei) * batch_center)
    simis = (feat_n @ new_mem.T) / t
    logz = jax.scipy.special.logsumexp(simis, axis=-1)
    tgt = jnp.take_along_axis(simis, label[:, None], axis=-1)[:, 0]
    return jnp.mean(logz - tgt), new_mem


if __name__ == "__main__":
    key = jax.random.PRNGKey(0)
    kf, kl, km, kf2, kl2 = jax.random.split(key, 5)

    # Case A: module defaults (num_cls=10, feat_dim=256), memory == zeros
    # exactly like Memory.__init__.
    B, C, D = 16, 10, 256
    feat = jax.random.normal(kf, (B, D), dtype=jnp.float32)
    label = jax.random.randint(kl, (B,), 0, C, dtype=jnp.int32)
    memory = jnp.zeros((C, D), dtype=jnp.float32)

    loss, new_mem = memory_forward(feat, label, memory, t=0.1)
    jax.block_until_ready((loss, new_mem))
    loss_r, new_mem_r = memory_forward_ref(feat, label, memory, t=0.1)
    assert jnp.allclose(new_mem, new_mem_r, rtol=1e-5, atol=1e-5)
    assert jnp.allclose(loss, loss_r, rtol=5e-2, atol=5e-2), (loss, loss_r)

    # Case B: unaligned batch / feature dims (exercise padding + masking),
    # warm (normalized random) memory, bf16 logits path.
    B2, D2 = 13, 200
    feat2 = jax.random.normal(kf2, (B2, D2), dtype=jnp.float32)
    label2 = jax.random.randint(kl2, (B2,), 0, C, dtype=jnp.int32)
    mem2 = jax.random.normal(km, (C, D2), dtype=jnp.float32)
    mem2 = mem2 / jnp.linalg.norm(mem2, axis=-1, keepdims=True)

    loss2, new_mem2 = memory_forward(feat2, label2, mem2, t=0.1)
    jax.block_until_ready((loss2, new_mem2))
    loss2_r, new_mem2_r = memory_forward_ref(feat2, label2, mem2, t=0.1)
    assert jnp.allclose(new_mem2, new_mem2_r, rtol=1e-5, atol=1e-5)
    assert jnp.allclose(loss2, loss2_r, rtol=5e-2, atol=5e-2), (loss2, loss2_r)

    # Case C: exact f32 logits path (tight tolerance).
    loss3, new_mem3 = memory_forward(feat2, label2, mem2, t=0.1, logits_in_bf16=False)
    jax.block_until_ready((loss3, new_mem3))
    assert jnp.allclose(new_mem3, new_mem2_r, rtol=1e-5, atol=1e-5)
    assert jnp.allclose(loss3, loss2_r, rtol=1e-3, atol=1e-3), (loss3, loss2_r)

    print("KERNEL_OK")
</pallas_src>

<mosaic_0001>
module attributes {stable_mosaic.version = 11 : i64} {
  func.func @memory_forward_kernel(%arg0: i32, %arg1: i32, %arg2: memref<16x256xf32, #tpu.memory_space<vmem>>, %arg3: memref<1x16xi32, #tpu.memory_space<vmem>>, %arg4: memref<10x256xf32, #tpu.memory_space<vmem>>, %arg5: memref<10x256xf32, #tpu.memory_space<vmem>>, %arg6: memref<1x1xf32, #tpu.memory_space<vmem>>, %arg7: memref<16x256xf32, #tpu.memory_space<vmem>>, %arg8: memref<10x256xf32, #tpu.memory_space<vmem>>, %arg9: memref<10x1xf32, #tpu.memory_space<vmem>>) attributes {dimension_semantics = [#tpu.dimension_semantics<arbitrary>, #tpu.dimension_semantics<arbitrary>], iteration_bounds = array<i64: 2, 1>, scalar_prefetch = 0 : i64, scratch_operands = 3 : i64, tpu.core_type = #tpu.core_type<tc>, window_params = [{transform_indices = @transform_0, window_bounds = array<i64: 16, 256>}, {transform_indices = @transform_1, window_bounds = array<i64: 1, 16>}, {pipeline_mode = #tpu.pipeline_mode<synchronous>, transform_indices = @transform_2, window_bounds = array<i64: 10, 256>}, {pipeline_mode = #tpu.pipeline_mode<synchronous>, transform_indices = @transform_3, window_bounds = array<i64: 10, 256>}, {pipeline_mode = #tpu.pipeline_mode<synchronous>, transform_indices = @transform_4, window_bounds = array<i64: 1, 1>}]} {
    %c0_i32 = arith.constant 0 : i32
    %0 = arith.cmpi eq, %arg0, %c0_i32 : i32
    %1 = arith.extui %0 : i1 to i32
    %c0_i32_0 = arith.constant 0 : i32
    %2 = arith.cmpi ne, %1, %c0_i32_0 : i32
    scf.if %2 {
      %c0_i32_2 = arith.constant 0 : i32
      %6 = arith.cmpi eq, %arg1, %c0_i32_2 : i32
      %7 = arith.extui %6 : i1 to i32
      %c0_i32_3 = arith.constant 0 : i32
      %8 = arith.cmpi ne, %7, %c0_i32_3 : i32
      scf.if %8 {
        %cst_22 = arith.constant 0.000000e+00 : f32
        %37 = vector.broadcast %cst_22 : f32 to vector<10x256xf32>
        %c0_23 = arith.constant 0 : index
        %c0_24 = arith.constant 0 : index
        %38 = vector.load %arg8[%c0_23, %c0_24] : memref<10x256xf32, #tpu.memory_space<vmem>>, vector<10x256xf32>
        tpu.vector_store %arg8[%c0_23, %c0_24], %37 {strides = array<i32>} : memref<10x256xf32, #tpu.memory_space<vmem>>, vector<10x256xf32>,
        %cst_25 = arith.constant 0.000000e+00 : f32
        %39 = vector.broadcast %cst_25 : f32 to vector<10x1xf32>
        %c0_26 = arith.constant 0 : index
        %c0_27 = arith.constant 0 : index
        %40 = vector.load %arg9[%c0_26, %c0_27] : memref<10x1xf32, #tpu.memory_space<vmem>>, vector<10x1xf32>
        tpu.vector_store %arg9[%c0_26, %c0_27], %39 {strides = array<i32>} : memref<10x1xf32, #tpu.memory_space<vmem>>, vector<10x1xf32>,
      } else {
      }
      %c0 = arith.constant 0 : index
      %c0_4 = arith.constant 0 : index
      %9 = vector.load %arg2[%c0, %c0_4] : memref<16x256xf32, #tpu.memory_space<vmem>>, vector<16x256xf32>
      %10 = arith.mulf %9, %9 : vector<16x256xf32>
      %cst = arith.constant dense<0.000000e+00> : vector<16xf32>
      %11 = vector.multi_reduction <add>, %10, %cst [1] : vector<16x256xf32> to vector<16xf32>
      %12 = vector.shape_cast %11 : vector<16xf32> to vector<16x1xf32>
      %cst_5 = arith.constant 1.000000e-24 : f32
      %13 = vector.broadcast %cst_5 : f32 to vector<16x1xf32>
      %14 = arith.maximumf %12, %13 : vector<16x1xf32>
      %15 = math.rsqrt %14 : vector<16x1xf32>
      %16 = vector.broadcast %15 : vector<16x1xf32> to vector<16x256xf32>
      %17 = arith.mulf %9, %16 : vector<16x256xf32>
      %c0_6 = arith.constant 0 : index
      %c0_7 = arith.constant 0 : index
      %18 = vector.load %arg7[%c0_6, %c0_7] : memref<16x256xf32, #tpu.memory_space<vmem>>, vector<16x256xf32>
      tpu.vector_store %arg7[%c0_6, %c0_7], %17 {strides = array<i32>} : memref<16x256xf32, #tpu.memory_space<vmem>>, vector<16x256xf32>,
      %c0_8 = arith.constant 0 : index
      %c0_9 = arith.constant 0 : index
      %19 = vector.load %arg3[%c0_8, %c0_9] : memref<1x16xi32, #tpu.memory_space<vmem>>, vector<1x16xi32>
      %20 = tpu.iota {dimensions = array<i32: 0>} : vector<10x16xi32>
      %21 = vector.broadcast %19 : vector<1x16xi32> to vector<10x16xi32>
      %22 = arith.cmpi eq, %20, %21 : vector<10x16xi32>
      %23 = arith.extui %22 : vector<10x16xi1> to vector<10x16xi32>
      %24 = arith.sitofp %23 : vector<10x16xi32> to vector<10x16xf32>
      %c0_10 = arith.constant 0 : index
      %c0_11 = arith.constant 0 : index
      %25 = vector.load %arg8[%c0_10, %c0_11] : memref<10x256xf32, #tpu.memory_space<vmem>>, vector<10x256xf32>
      %cst_12 = arith.constant dense<0.000000e+00> : vector<10x256xf32>
      %26 = tpu.matmul %24, %17, %cst_12 {dimension_numbers = #tpu.dot_dimension_numbers<[1], [0], [0], [1], [0, 0, 1, 1], [], []>} : vector<10x16xf32>, vector<16x256xf32>, vector<10x256xf32> -> vector<10x256xf32>
      %27 = arith.addf %25, %26 : vector<10x256xf32>
      %c0_13 = arith.constant 0 : index
      %c0_14 = arith.constant 0 : index
      %28 = vector.load %arg8[%c0_13, %c0_14] : memref<10x256xf32, #tpu.memory_space<vmem>>, vector<10x256xf32>
      tpu.vector_store %arg8[%c0_13, %c0_14], %27 {strides = array<i32>} : memref<10x256xf32, #tpu.memory_space<vmem>>, vector<10x256xf32>,
      %c0_15 = arith.constant 0 : index
      %c0_16 = arith.constant 0 : index
      %29 = vector.load %arg9[%c0_15, %c0_16] : memref<10x1xf32, #tpu.memory_space<vmem>>, vector<10x1xf32>
      %cst_17 = arith.constant dense<0.000000e+00> : vector<10xf32>
      %30 = vector.multi_reduction <add>, %24, %cst_17 [1] : vector<10x16xf32> to vector<10xf32>
      %31 = vector.shape_cast %30 : vector<10xf32> to vector<10x1xf32>
      %32 = arith.addf %29, %31 : vector<10x1xf32>
      %c0_18 = arith.constant 0 : index
      %c0_19 = arith.constant 0 : index
      %33 = vector.load %arg9[%c0_18, %c0_19] : memref<10x1xf32, #tpu.memory_space<vmem>>, vector<10x1xf32>
      tpu.vector_store %arg9[%c0_18, %c0_19], %32 {strides = array<i32>} : memref<10x1xf32, #tpu.memory_space<vmem>>, vector<10x1xf32>,
      %c0_i32_20 = arith.constant 0 : i32
      %34 = arith.cmpi eq, %arg1, %c0_i32_20 : i32
      %35 = arith.extui %34 : i1 to i32
      %c0_i32_21 = arith.constant 0 : i32
      %36 = arith.cmpi ne, %35, %c0_i32_21 : i32
      scf.if %36 {
        %c0_22 = arith.constant 0 : index
        %c0_23 = arith.constant 0 : index
        %37 = vector.load %arg4[%c0_22, %c0_23] : memref<10x256xf32, #tpu.memory_space<vmem>>, vector<10x256xf32>
        %c0_24 = arith.constant 0 : index
        %c0_25 = arith.constant 0 : index
        %38 = vector.load %arg8[%c0_24, %c0_25] : memref<10x256xf32, #tpu.memory_space<vmem>>, vector<10x256xf32>
        %39 = arith.mulf %38, %38 : vector<10x256xf32>
        %cst_26 = arith.constant dense<0.000000e+00> : vector<10xf32>
        %40 = vector.multi_reduction <add>, %39, %cst_26 [1] : vector<10x256xf32> to vector<10xf32>
        %41 = vector.shape_cast %40 : vector<10xf32> to vector<10x1xf32>
        %cst_27 = arith.constant 1.000000e-24 : f32
        %42 = vector.broadcast %cst_27 : f32 to vector<10x1xf32>
        %43 = arith.maximumf %41, %42 : vector<10x1xf32>
        %44 = math.rsqrt %43 : vector<10x1xf32>
        %45 = vector.broadcast %44 : vector<10x1xf32> to vector<10x256xf32>
        %46 = arith.mulf %38, %45 : vector<10x256xf32>
        %c0_28 = arith.constant 0 : index
        %c0_29 = arith.constant 0 : index
        %47 = vector.load %arg9[%c0_28, %c0_29] : memref<10x1xf32, #tpu.memory_space<vmem>>, vector<10x1xf32>
        %cst_30 = arith.constant 0.000000e+00 : f32
        %48 = vector.broadcast %cst_30 : f32 to vector<10x1xf32>
        %49 = arith.cmpf ogt, %47, %48 : vector<10x1xf32>
        %50 = arith.extui %49 : vector<10x1xi1> to vector<10x1xi32>
        %51 = arith.sitofp %50 : vector<10x1xi32> to vector<10x1xf32>
        %52 = arith.mulf %37, %46 : vector<10x256xf32>
        %cst_31 = arith.constant dense<0.000000e+00> : vector<10xf32>
        %53 = vector.multi_reduction <add>, %52, %cst_31 [1] : vector<10x256xf32> to vector<10xf32>
        %54 = vector.shape_cast %53 : vector<10xf32> to vector<10x1xf32>
        %cst_32 = arith.constant 1.000000e+00 : f32
        %55 = vector.broadcast %cst_32 : f32 to vector<10x1xf32>
        %56 = arith.subf %55, %54 : vector<10x1xf32>
        %57 = arith.mulf %56, %51 : vector<10x1xf32>
        %cst_33 = arith.constant 1.000000e+00 : f32
        %58 = vector.broadcast %cst_33 : f32 to vector<10x1xf32>
        %59 = arith.subf %58, %57 : vector<10x1xf32>
        %60 = vector.broadcast %59 : vector<10x1xf32> to vector<10x256xf32>
        %61 = arith.mulf %60, %37 : vector<10x256xf32>
        %cst_34 = arith.constant 1.000000e+00 : f32
        %62 = vector.broadcast %cst_34 : f32 to vector<10x1xf32>
        %63 = arith.subf %62, %59 : vector<10x1xf32>
        %64 = vector.broadcast %63 : vector<10x1xf32> to vector<10x256xf32>
        %65 = arith.mulf %64, %46 : vector<10x256xf32>
        %66 = arith.addf %61, %65 : vector<10x256xf32>
        %67 = arith.mulf %66, %66 : vector<10x256xf32>
        %cst_35 = arith.constant dense<0.000000e+00> : vector<10xf32>
        %68 = vector.multi_reduction <add>, %67, %cst_35 [1] : vector<10x256xf32> to vector<10xf32>
        %69 = vector.shape_cast %68 : vector<10xf32> to vector<10x1xf32>
        %cst_36 = arith.constant 1.000000e-24 : f32
        %70 = vector.broadcast %cst_36 : f32 to vector<10x1xf32>
        %71 = arith.maximumf %69, %70 : vector<10x1xf32>
        %72 = math.rsqrt %71 : vector<10x1xf32>
        %73 = vector.broadcast %72 : vector<10x1xf32> to vector<10x256xf32>
        %74 = arith.mulf %66, %73 : vector<10x256xf32>
        %c0_37 = arith.constant 0 : index
        %c0_38 = arith.constant 0 : index
        %75 = vector.load %arg5[%c0_37, %c0_38] : memref<10x256xf32, #tpu.memory_space<vmem>>, vector<10x256xf32>
        tpu.vector_store %arg5[%c0_37, %c0_38], %74 {strides = array<i32>} : memref<10x256xf32, #tpu.memory_space<vmem>>, vector<10x256xf32>,
      } else {
      }
    } else {
    }
    %c1_i32 = arith.constant 1 : i32
    %3 = arith.cmpi eq, %arg0, %c1_i32 : i32
    %4 = arith.extui %3 : i1 to i32
    %c0_i32_1 = arith.constant 0 : i32
    %5 = arith.cmpi ne, %4, %c0_i32_1 : i32
    scf.if %5 {
      %c0 = arith.constant 0 : index
      %c0_2 = arith.constant 0 : index
      %6 = vector.load %arg5[%c0, %c0_2] : memref<10x256xf32, #tpu.memory_space<vmem>>, vector<10x256xf32>
      %c0_i32_3 = arith.constant 0 : i32
      %7 = arith.cmpi eq, %arg1, %c0_i32_3 : i32
      %8 = arith.extui %7 : i1 to i32
      %c0_i32_4 = arith.constant 0 : i32
      %9 = arith.cmpi ne, %8, %c0_i32_4 : i32
      scf.if %9 {
        %c0_20 = arith.constant 0 : index
        %c0_21 = arith.constant 0 : index
        %39 = vector.load %arg8[%c0_20, %c0_21] : memref<10x256xf32, #tpu.memory_space<vmem>>, vector<10x256xf32>
        %40 = arith.mulf %6, %39 : vector<10x256xf32>
        %41 = vector.shape_cast %40 : vector<10x256xf32> to vector<1x10x256xf32>
        %cst_22 = arith.constant dense<0.000000e+00> : vector<1xf32>
        %42 = vector.multi_reduction <add>, %41, %cst_22 [1, 2] : vector<1x10x256xf32> to vector<1xf32>
        %43 = vector.shape_cast %42 : vector<1xf32> to vector<1x1x1xf32>
        %44 = vector.extract %43[0, 0, 0] : f32 from vector<1x1x1xf32>
        %45 = vector.broadcast %44 : f32 to vector<1x1xf32>
        %cst_23 = arith.constant -1.000000e+01 : f32
        %46 = vector.broadcast %cst_23 : f32 to vector<1x1xf32>
        %47 = arith.mulf %46, %45 : vector<1x1xf32>
        %c0_24 = arith.constant 0 : index
        %c0_25 = arith.constant 0 : index
        %48 = vector.load %arg6[%c0_24, %c0_25] : memref<1x1xf32, #tpu.memory_space<vmem>>, vector<1x1xf32>
        tpu.vector_store %arg6[%c0_24, %c0_25], %47 {strides = array<i32>} : memref<1x1xf32, #tpu.memory_space<vmem>>, vector<1x1xf32>,
      } else {
      }
      %c0_5 = arith.constant 0 : index
      %c0_6 = arith.constant 0 : index
      %10 = vector.load %arg7[%c0_5, %c0_6] : memref<16x256xf32, #tpu.memory_space<vmem>>, vector<16x256xf32>
      %11 = arith.truncf %6 : vector<10x256xf32> to vector<10x256xbf16>
      %12 = arith.truncf %10 : vector<16x256xf32> to vector<16x256xbf16>
      %cst = arith.constant dense<0.000000e+00> : vector<10x16xf32>
      %13 = tpu.matmul %11, %12, %cst {dimension_numbers = #tpu.dot_dimension_numbers<[1], [1], [0], [0], [0, 0, 1, 0], [], []>} : vector<10x256xbf16>, vector<16x256xbf16>, vector<10x16xf32> -> vector<10x16xf32>
      %cst_7 = arith.constant 1.000000e+01 : f32
      %14 = vector.broadcast %cst_7 : f32 to vector<10x16xf32>
      %15 = arith.mulf %13, %14 : vector<10x16xf32>
      %cst_8 = arith.constant dense<0xFF800000> : vector<16xf32>
      %16 = vector.multi_reduction <maximumf>, %15, %cst_8 [0] : vector<10x16xf32> to vector<16xf32>
      %17 = vector.shape_cast %16 : vector<16xf32> to vector<1x16xf32>
      %18 = vector.broadcast %17 : vector<1x16xf32> to vector<10x16xf32>
      %19 = arith.subf %15, %18 : vector<10x16xf32>
      %20 = math.exp %19 : vector<10x16xf32>
      %cst_9 = arith.constant dense<0.000000e+00> : vector<16xf32>
      %21 = vector.multi_reduction <add>, %20, %cst_9 [0] : vector<10x16xf32> to vector<16xf32>
      %22 = vector.shape_cast %21 : vector<16xf32> to vector<1x16xf32>
      %23 = math.log %22 : vector<1x16xf32>
      %24 = arith.addf %17, %23 : vector<1x16xf32>
      %c0_10 = arith.constant 0 : index
      %c0_11 = arith.constant 0 : index
      %25 = vector.load %arg3[%c0_10, %c0_11] : memref<1x16xi32, #tpu.memory_space<vmem>>, vector<1x16xi32>
      %c0_i32_12 = arith.constant 0 : i32
      %26 = vector.broadcast %c0_i32_12 : i32 to vector<1x16xi32>
      %27 = arith.cmpi sge, %25, %26 : vector<1x16xi32>
      %28 = arith.extui %27 : vector<1x16xi1> to vector<1x16xi32>
      %29 = arith.sitofp %28 : vector<1x16xi32> to vector<1x16xf32>
      %c0_13 = arith.constant 0 : index
      %c0_14 = arith.constant 0 : index
      %30 = vector.load %arg6[%c0_13, %c0_14] : memref<1x1xf32, #tpu.memory_space<vmem>>, vector<1x1xf32>
      %31 = arith.mulf %24, %29 : vector<1x16xf32>
      %cst_15 = arith.constant dense<0.000000e+00> : vector<1xf32>
      %32 = vector.multi_reduction <add>, %31, %cst_15 [1] : vector<1x16xf32> to vector<1xf32>
      %33 = vector.shape_cast %32 : vector<1xf32> to vector<1x1xf32>
      %34 = arith.addf %30, %33 : vector<1x1xf32>
      %c0_16 = arith.constant 0 : index
      %c0_17 = arith.constant 0 : index
      %35 = vector.load %arg6[%c0_16, %c0_17] : memref<1x1xf32, #tpu.memory_space<vmem>>, vector<1x1xf32>
      tpu.vector_store %arg6[%c0_16, %c0_17], %34 {strides = array<i32>} : memref<1x1xf32, #tpu.memory_space<vmem>>, vector<1x1xf32>,
      %c0_i32_18 = arith.constant 0 : i32
      %36 = arith.cmpi eq, %arg1, %c0_i32_18 : i32
      %37 = arith.extui %36 : i1 to i32
      %c0_i32_19 = arith.constant 0 : i32
      %38 = arith.cmpi ne, %37, %c0_i32_19 : i32
      scf.if %38 {
        %c0_20 = arith.constant 0 : index
        %c0_21 = arith.constant 0 : index
        %39 = vector.load %arg6[%c0_20, %c0_21] : memref<1x1xf32, #tpu.memory_space<vmem>>, vector<1x1xf32>
        %cst_22 = arith.constant 6.250000e-02 : f32
        %40 = vector.broadcast %cst_22 : f32 to vector<1x1xf32>
        %41 = arith.mulf %39, %40 : vector<1x1xf32>
        %c0_23 = arith.constant 0 : index
        %c0_24 = arith.constant 0 : index
        %42 = vector.load %arg6[%c0_23, %c0_24] : memref<1x1xf32, #tpu.memory_space<vmem>>, vector<1x1xf32>
        tpu.vector_store %arg6[%c0_23, %c0_24], %41 {strides = array<i32>} : memref<1x1xf32, #tpu.memory_space<vmem>>, vector<1x1xf32>,
      } else {
      }
    } else {
    }
    return
  }
  func.func @transform_0(%arg0: i32, %arg1: i32) -> (i32, i32) {
    %c0_i32 = arith.constant 0 : i32
    %c0_i32_0 = arith.constant 0 : i32
    return %arg1, %c0_i32 : i32, i32
  }
  func.func @transform_1(%arg0: i32, %arg1: i32) -> (i32, i32) {
    %c0_i32 = arith.constant 0 : i32
    %c0_i32_0 = arith.constant 0 : i32
    return %c0_i32, %arg1 : i32, i32
  }
  func.func @transform_2(%arg0: i32, %arg1: i32) -> (i32, i32) {
    %c0_i32 = arith.constant 0 : i32
    %c0_i32_0 = arith.constant 0 : i32
    %c0_i32_1 = arith.constant 0 : i32
    return %c0_i32, %c0_i32_0 : i32, i32
  }
  func.func @transform_3(%arg0: i32, %arg1: i32) -> (i32, i32) {
    %c0_i32 = arith.constant 0 : i32
    %c0_i32_0 = arith.constant 0 : i32
    %c0_i32_1 = arith.constant 0 : i32
    return %c0_i32, %c0_i32_0 : i32, i32
  }
  func.func @transform_4(%arg0: i32, %arg1: i32) -> (i32, i32) {
    %c0_i32 = arith.constant 0 : i32
    %c0_i32_0 = arith.constant 0 : i32
    %c0_i32_1 = arith.constant 0 : i32
    return %c0_i32, %c0_i32_0 : i32, i32
  }
}

</mosaic_0001>

<bundles_post_ra>
// kernel: tpu_custom_call.1
= control target key start
LH: loop header
LB: loop body
LE: loop exit
PB: predicated region body
PF: predicated region fallthrough
CT: control target
= control target key end

     0   :  { %10 = vsyncpa [#allocation6], 0  ;;  %s1151_s0 = inlined_call_operand.vmem [shape: f32[16,256], index: 0, kind: input, shape index: {}]   ;;  %s1152_s1 = inlined_call_operand.vmem [shape: s32[1,16], index: 1, kind: input, shape index: {}]   ;;  %s1153_s2 = inlined_call_operand.hbm [shape: f32[10,256], index: 2, kind: input, shape index: {}, may-alias: {2,3}]   ;;  %s1154_s3 = inlined_call_operand.hbm [shape: f32[10,256], index: 3, kind: output, shape index: {0}, may-alias: {2,3}]   ;;  %s1155_s4 = inlined_call_operand.hbm [shape: f32[1,1], index: 4, kind: output, shape index: {1}]  }
   0x1   :  { %11 = vsyncpa [#allocation7], 0 }
   0x2   :  { %12 = vsyncpa [#allocation10], 0  ;;  %s1035_s15 = smov 0   ;;  %s1037_s16 = smov 0  }
   0x3   :  { %s1039_s17 = smov 0  }
   0x4 LB: > { %s770_s18 = sadd.s32 4294967295, %s998_s17   ;;  %s30_s19 = sadd.s32 1, %s994_s16  ;;  %s998_s17 = sphi %s1039_s17, %s18_s17   ;;  %s994_s16 = sphi %s1037_s16, %s1158_s16   ;;  %s990_s15 = sphi %s1035_s15, %s1157_s15  }
   0x5   : > { %p32_p0 = scmp.ge.s32.totalorder %s30_s19, 2  ;;  %p771_p1 = scmp.ge.s32.totalorder %s998_s17, 1 }
   0x6   : > { %p150_p2 = scmp.lt.s32.totalorder %s998_s17, 3  ;;  %p816_p4 = scmp.eq.s32.totalorder %s770_s18, 0 }
   0x7   : > { %s1160_s19 = smov (%p32_p0, %s30_s19), 0  ;;  %s177_s22 = sshll.u32 %s1153_s2, 4  ;;  %s178_s22 = int_to_ptr.hbm [resolvable:$true] %s177_s22 }
   0x8   : > { %p151_p3 = pnand %p771_p1, %p150_p2  ;;  %s1000_s23 = smov [#allocation5]  }
   0x9   : > { %s179_s24 = sshll.u32 %s1000_s23, 4  ;;  %s1001_s25 = smov 256   ;;  %s180_s24 = int_to_ptr.vmem [resolvable:$true] %s179_s24 }
   0xa   : > { %p812_p5 = pneg %p151_p3  ;;  %s1002_s26 = smov 16  }
   0xb   : > { %195 = sbr.rel (%p151_p3) target bundleno = 1212 (0x4bc), region = 32 }
   0xc   : > { %p813_p6 = pnand %p816_p4, %p812_p5 }
   0xe   : > { %815 = dma.hbm_to_vmem [thread:$0]  (!%p813_p6), %s178_s22, 512, %s180_s24, [#allocation6], %s1001_s25, %s1001_s25, %s1002_s26  }
  0x10   : > { %977 = dma.done.wait (%p816_p4), [#allocation6], 512  }
  0x11   : > { %979 = vsyncadd (%p816_p4), [#allocation6], 4294966784  ;;  %p777_p7 = scmp.ne.s32.totalorder %s990_s15, 0 }
  0x13   : > { %235 = sbr.rel (%p777_p7) target bundleno = 860 (0x35c), region = 40 }
  0x18   : > { %v250_v0 = vld [vmem:[%s1151_s0 + $0x10] sm:$0xff]  ;;  %v251_v1 = vld [vmem:[%s1151_s0 + $0x18] sm:$0xff]  ;;  %v248_v4 = vld [vmem:[%s1151_s0] sm:$0xff]  ;;  %v1003_v11 = vmov 0.0   ;;  %v293_v19 = vlaneseq  ;;  %vm307_vm8 = vcmask 130048   ;;  %vm401_vm9 = vcmask 1041408  }
  0x19   : > { %v254_v2 = vmul.f32 %v250_v0, %v250_v0  ;;  %v255_v3 = vmul.f32 %v251_v1, %v251_v1  ;;  %v249_v5 = vld [vmem:[%s1151_s0 + $0x8] sm:$0xff]  ;;  %v252_v7 = vmul.f32 %v248_v4, %v248_v4  ;;  %242 = vst [vmem:[#allocation3 + $0x8] sm:$0x3] %v1003_v11  ;;  %v859_v31 = vld [vmem:[%s1152_s1] ss:$0 sm:$0xff]  ;;  %vm373_vm10 = vcmask 123904  }
  0x1a   : > { %v253_v8 = vmul.f32 %v249_v5, %v249_v5  ;;  %243 = vst [vmem:[#allocation3 + $0x10] sm:$0x3] %v1003_v11  ;;  %v294_v24 = vshrl.u32 %v293_v19, 7  ;;  %vm246_vm11 = vcmask 1024  }
  0x1b   : > { %v259_v6 = vadd.f32 %v255_v3, %v254_v2  ;;  %247 = vst.msk [vmem:[#allocation4 + $0x8] sm:$0x3] %vm246_vm11, %v1003_v11 }
  0x1c   : > { %v256_v9 = vadd.f32 %v253_v8, %v252_v7  ;;  %v295_v30 = vadd.s32 8, %v294_v24  ;;  %vm297_vm7 = vcmp.eq.s32.totalorder %v294_v24, %v859_v31  ;;  %v388_v8 = vld [vmem:[#allocation5 + $0x10] sm:$0x3] }
  0x1d   : > { %260 = vadd.xlane.f32.xlu0 %v259_v6  ;;  %v778_v38 = vsel %vm297_vm7, 1.0, %v1003_v11 }
  0x1e   : > { %vm298_vm6 = vcmp.eq.s32.totalorder %v295_v30, %v859_v31  ;;  %v370_v58 = vsel %vm307_vm8, %v778_v38, 0.0 }
  0x1f   : > { %v779_v37 = vsel %vm298_vm6, 1.0, %v1003_v11 }
  0x20   : > { %v305_v41 = vld [vmem:[#allocation3 + $0x8] sm:$0x3]  ;;  %v374_v57 = vsel %vm373_vm10, %v779_v37, 0.0 }
  0x21   : > { %v306_v42 = vld [vmem:[#allocation3 + $0x10] sm:$0x3]  ;;  %375 = vadd.xlane.f32.xlu2 %v374_v57 }
  0x22   : > { %v369_v30 = vld [vmem:[#allocation4 + $0x8] sm:$0x3] }
  0x25   : > { %257 = vadd.xlane.f32.xlu0 %v256_v9  ;;  %v389_v9 = vld [vmem:[#allocation5 + $0x18] sm:$0x3] }
  0x29   : > { %371 = vadd.xlane.f32.xlu2 %v370_v58 }
  0x90   : > { %v261_v10 = vpop.xlane.xlu0 %260 }
  0x91   : > { %v263_v12 = vmax.f32 %v261_v10, 1e-24 }
  0x93   : > { %860 = vrsqrt.f32 %v263_v12  ;;  %vm280_vm1 = vweird.f32 %v263_v12 }
  0x94   : > { %v376_v31 = vpop.xlane.xlu2 %375 }
  0x98   : > { %v258_v13 = vpop.xlane.xlu0 %257 }
  0x99   : > { %v861_v14 = vpop.eup %860  ;;  %v262_v15 = vmax.f32 %v258_v13, 1e-24 }
  0x9a   : > { %v275_v16 = vmul.f32 %v861_v14, %v263_v12  ;;  %vm281_vm0 = vweird.f32 %v861_v14 }
  0x9b   : > { %862 = vrsqrt.f32 %v262_v15  ;;  %vm282_vm2 = vmor %vm280_vm1, %vm281_vm0  ;;  %vm270_vm4 = vweird.f32 %v262_v15 }
  0x9c   : > { %v276_v17 = vmul.f32 %v861_v14, %v275_v16 }
  0x9e   : > { %v277_v18 = vmul.f32 0.5, %v276_v17 }
  0xa0   : > { %v278_v20 = vsub.f32 1.5, %v277_v18 }
  0xa1   : > { %v863_v21 = vpop.eup %862 }
  0xa2   : > { %v265_v22 = vmul.f32 %v863_v21, %v262_v15  ;;  %v279_v23 = vmul.f32 %v861_v14, %v278_v20  ;;  %vm271_vm3 = vweird.f32 %v863_v21 }
  0xa3   : > { %vm272_vm5 = vmor %vm270_vm4, %vm271_vm3 }
  0xa4   : > { %v266_v25 = vmul.f32 %v863_v21, %v265_v22  ;;  %v283_v26 = vsel %vm282_vm2, %v861_v14, %v279_v23  ;;  %v386_v22 = vld [vmem:[#allocation5] sm:$0xff]  ;;  %v387_v23 = vld [vmem:[#allocation5 + $0x8] sm:$0xff]  ;;  %vm244_vm2 = vcmask 7168  }
  0xa5   : > { %v286_v27 = vmul.f32 %v283_v26, %v250_v0  ;;  %v287_v28 = vmul.f32 %v283_v26, %v251_v1  ;;  %245 = vst.msk [vmem:[#allocation4] sm:$0xff] %vm244_vm2, %v1003_v11 }
  0xa6   : > { %v267_v29 = vmul.f32 0.5, %v266_v25 }
  0xa7   : > { %290 = vst [vmem:[#allocation2 + $0x18] sm:$0xff] %v286_v27  ;;  %328 = vmatpush.msra.mxu0 %v286_v27  ;;  %794 = vmatpush.msra.mxu2 %v286_v27 }
  0xa8   : > { %v268_v32 = vsub.f32 1.5, %v267_v29  ;;  %291 = vst [vmem:[#allocation2 + $0x8] sm:$0xff] %v287_v28  ;;  %351 = vmatpush.msra.mxu1 %v287_v28  ;;  %796 = vmatpush.msra.mxu3 %v287_v28 }
  0xaa   : > { %v269_v33 = vmul.f32 %v863_v21, %v268_v32  ;;  %v378_v32 = vadd.f32 %v376_v31, %v369_v30 }
  0xac   : > { %v273_v34 = vsel %vm272_vm5, %v863_v21, %v269_v33  ;;  %382 = vst.msk [vmem:[#allocation4 + $0x8] sm:$0x3] %vm246_vm11, %v378_v32  ;;  %v368_v33 = vld [vmem:[#allocation4] sm:$0xff] }
  0xad   : > { %v284_v35 = vmul.f32 %v273_v34, %v248_v4  ;;  %v285_v36 = vmul.f32 %v273_v34, %v249_v5  ;;  %v372_v34 = vpop.xlane.xlu2 %371 }
  0xaf   : > { %288 = vst [vmem:[#allocation2 + $0x10] sm:$0xff] %v284_v35  ;;  %329 = vmatpush.msra.mxu0 %v284_v35  ;;  %795 = vmatpush.msra.mxu2 %v284_v35  ;;  %v377_v35 = vadd.f32 %v372_v34, %v368_v33 }
  0xb0   : > { %289 = vst [vmem:[#allocation2] sm:$0xff] %v285_v36  ;;  %352 = vmatpush.msra.mxu1 %v285_v36  ;;  %797 = vmatpush.msra.mxu3 %v285_v36  ;;  %v1004_v36 = vmov 0  }
  0xb1   : > { %781 = vmatmul.msk.f32.vlgmr.msra.gmra.mxu2 %vm307_vm8, %v779_v37  ;;  %783 = vmatmul.msk.f32.vlgmr.msra.gmra.mxu3 %vm307_vm8, %v779_v37  ;;  %380 = vst.msk [vmem:[#allocation4] sm:$0xff] %vm244_vm2, %v377_v35 }
  0xb2   : > { %780 = vmatmul.msk.f32.vlgmr.msra.gmra.mxu0 %vm307_vm8, %v778_v38  ;;  %782 = vmatmul.msk.f32.vlgmr.msra.gmra.mxu1 %vm307_vm8, %v778_v38 }
  0xb3   : > { %856 = vset.pattern.permute.xlu2 %v1004_v36  ;;  %857 = vset.pattern.permute.xlu0 %v1004_v36  ;;  %v434_v37 = vld [vmem:[#allocation4 + $0x8] sm:$0x3] }
  0xb4   : > { %858 = vset.pattern.permute.xlu1 %v1004_v36  ;;  %vm436_vm3 = vcmp.gt.f32.partialorder %v434_v37, 0.0 }
  0xb5   : > { %v785_v38 = vsel %vm436_vm3, 1.0, %v1003_v11 }
 0x12f   : > { %v1085_v39 = vpop.f32.mrf.mxu0  ;;  %v1087_v40 = vpop.f32.mrf.mxu1 }
 0x130   : > { %364 = vst [vmem:[#allocation3] sm:$0xff] %v1085_v39  ;;  %v394_v54 = vmul.f32 %v1085_v39, %v1085_v39  ;;  %v395_v55 = vmul.f32 %v1087_v40, %v1087_v40 }
 0x131   : > { %365 = vst [vmem:[#allocation3 + $0x18] sm:$0xff] %v1087_v40 }
 0x132   : > { %v398_v56 = vadd.f32 %v395_v55, %v394_v54 }
 0x134   : > { %v334_v43 = vpop.f32.mrf.mxu2  ;;  %v357_v44 = vpop.f32.mrf.mxu3 }
 0x135   : > { %v362_v45 = vadd.f32 %v334_v43, %v305_v41  ;;  %v363_v46 = vadd.f32 %v357_v44, %v306_v42  ;;  %v433_v41 = vld [vmem:[#allocation4] sm:$0xff] }
 0x136   : > { %vm435_vm4 = vcmp.gt.f32.partialorder %v433_v41, 0.0 }
 0x137   : > { %366 = vst [vmem:[#allocation3 + $0x8] sm:$0x3] %v362_v45  ;;  %v784_v44 = vsel %vm435_vm4, 1.0, %v1003_v11 }
 0x138   : > { %367 = vst [vmem:[#allocation3 + $0x10] sm:$0x3] %v363_v46 }
 0x13e   : > { %v392_v47 = vld [vmem:[#allocation3 + $0x8] sm:$0x3] }
 0x13f   : > { %v393_v48 = vld [vmem:[#allocation3 + $0x10] sm:$0x3]  ;;  %v396_v49 = vmul.f32 %v392_v47, %v392_v47 }
 0x140   : > { %v397_v50 = vmul.f32 %v393_v48, %v393_v48 }
 0x141   : > { %v402_v51 = vsel %vm401_vm9, %v396_v49, 0.0 }
 0x142   : > { %v403_v52 = vsel %vm401_vm9, %v397_v50, 0.0 }
 0x143   : > { %v404_v53 = vadd.f32 %v403_v52, %v402_v51 }
 0x145   : > { %405 = vadd.xlane.f32.xlu1 %v404_v53 }
 0x14d   : > { %399 = vadd.xlane.f32.xlu1 %v398_v56 }
 0x1b8   : > { %v406_v59 = vpop.xlane.xlu1 %405 }
 0x1b9   : > { %v408_v60 = vmax.f32 %v406_v59, 1e-24 }
 0x1bb   : > { %864 = vrsqrt.f32 %v408_v60  ;;  %vm425_vm13 = vweird.f32 %v408_v60 }
 0x1c0   : > { %v400_v61 = vpop.xlane.xlu1 %399 }
 0x1c1   : > { %v865_v62 = vpop.eup %864  ;;  %v407_v63 = vmax.f32 %v400_v61, 1e-24 }
 0x1c2   : > { %v420_v0 = vmul.f32 %v865_v62, %v408_v60  ;;  %vm426_vm12 = vweird.f32 %v865_v62 }
 0x1c3   : > { %866 = vrsqrt.f32 %v407_v63  ;;  %vm427_vm14 = vmor %vm425_vm13, %vm426_vm12  ;;  %vm415_vm0 = vweird.f32 %v407_v63 }
 0x1c4   : > { %v421_v1 = vmul.f32 %v865_v62, %v420_v0 }
 0x1c6   : > { %v422_v2 = vmul.f32 0.5, %v421_v1 }
 0x1c8   : > { %v423_v3 = vsub.f32 1.5, %v422_v2 }
 0x1c9   : > { %v867_v4 = vpop.eup %866 }
 0x1ca   : > { %v424_v5 = vmul.f32 %v865_v62, %v423_v3  ;;  %v410_v6 = vmul.f32 %v867_v4, %v407_v63  ;;  %vm416_vm15 = vweird.f32 %v867_v4 }
 0x1cb   : > { %vm417_vm1 = vmor %vm415_vm0, %vm416_vm15 }
 0x1cc   : > { %v411_v7 = vmul.f32 %v867_v4, %v410_v6  ;;  %v428_v10 = vsel %vm427_vm14, %v865_v62, %v424_v5 }
 0x1cd   : > { %v431_v12 = vmul.f32 %v428_v10, %v392_v47  ;;  %v432_v13 = vmul.f32 %v428_v10, %v393_v48 }
 0x1ce   : > { %v412_v14 = vmul.f32 0.5, %v411_v7 }
 0x1cf   : > { %v443_v15 = vmul.f32 %v431_v12, %v388_v8  ;;  %v444_v16 = vmul.f32 %v432_v13, %v389_v9 }
 0x1d0   : > { %v413_v17 = vsub.f32 1.5, %v412_v14 }
 0x1d1   : > { %v448_v18 = vsel %vm401_vm9, %v443_v15, 0.0  ;;  %v449_v19 = vsel %vm401_vm9, %v444_v16, 0.0 }
 0x1d2   : > { %v414_v20 = vmul.f32 %v867_v4, %v413_v17  ;;  %v450_v21 = vadd.f32 %v449_v19, %v448_v18 }
 0x1d4   : > { %451 = vadd.xlane.f32.xlu0 %v450_v21  ;;  %v418_v24 = vsel %vm417_vm1, %v867_v4, %v414_v20 }
 0x1d5   : > { %v429_v25 = vmul.f32 %v418_v24, %v1085_v39  ;;  %v430_v26 = vmul.f32 %v418_v24, %v1087_v40 }
 0x1d7   : > { %v441_v27 = vmul.f32 %v429_v25, %v386_v22  ;;  %v442_v28 = vmul.f32 %v430_v26, %v387_v23 }
 0x1d9   : > { %v445_v29 = vadd.f32 %v442_v28, %v441_v27 }
 0x1db   : > { %446 = vadd.xlane.f32.xlu1 %v445_v29 }
 0x247   : > { %v452_v39 = vpop.xlane.xlu0 %451 }
 0x248   : > { %v454_v40 = vsub.f32 1.0, %v452_v39 }
 0x24a   : > { %v456_v42 = vmul.f32 %v785_v38, %v454_v40 }
 0x24c   : > { %v458_v43 = vsub.f32 1.0, %v456_v42 }
 0x24e   : > { %466 = vperm.xlu2 %856, %v458_v43   ;;  %v447_v45 = vpop.xlane.xlu1 %446  ;;  %v474_v46 = vsub.f32 1.0, %v458_v43 }
 0x24f   : > { %v453_v47 = vsub.f32 1.0, %v447_v45 }
 0x250   : > { %482 = vperm.xlu0 %857, %v474_v46  }
 0x251   : > { %v455_v48 = vmul.f32 %v784_v44, %v453_v47 }
 0x253   : > { %v457_v49 = vsub.f32 1.0, %v455_v48 }
 0x255   : > { %461 = vperm.xlu1 %858, %v457_v49   ;;  %v473_v50 = vsub.f32 1.0, %v457_v49 }
 0x257   : > { %477 = vperm.xlu2 %856, %v473_v50  }
 0x2a8   : > { %v467_v51 = vpop.permute.xlu2 %466 }
 0x2a9   : > { %v471_v53 = vmul.f32 %v467_v51, %v388_v8  ;;  %v472_v54 = vmul.f32 %v467_v51, %v389_v9 }
 0x2b1   : > { %v478_v57 = vpop.permute.xlu2 %477 }
 0x2b2   : > { %v485_v62 = vmul.f32 %v478_v57, %v429_v25  ;;  %v486_v63 = vmul.f32 %v478_v57, %v430_v26 }
 0x2c2   : > { %v483_v52 = vpop.permute.xlu0 %482 }
 0x2c3   : > { %v487_v55 = vmul.f32 %v483_v52, %v431_v12  ;;  %v488_v56 = vmul.f32 %v483_v52, %v432_v13 }
 0x2c5   : > { %v491_v58 = vadd.f32 %v487_v55, %v471_v53  ;;  %v492_v59 = vadd.f32 %v488_v56, %v472_v54 }
 0x2c7   : > { %v462_v60 = vpop.permute.xlu1 %461  ;;  %v495_v11 = vmul.f32 %v491_v58, %v491_v58  ;;  %v496_v61 = vmul.f32 %v492_v59, %v492_v59 }
 0x2c8   : > { %v469_v0 = vmul.f32 %v462_v60, %v386_v22  ;;  %v470_v1 = vmul.f32 %v462_v60, %v387_v23 }
 0x2c9   : > { %v500_v2 = vsel %vm401_vm9, %v495_v11, 0.0  ;;  %v501_v3 = vsel %vm401_vm9, %v496_v61, 0.0 }
 0x2ca   : > { %v489_v4 = vadd.f32 %v485_v62, %v469_v0  ;;  %v490_v5 = vadd.f32 %v486_v63, %v470_v1  ;;  %v502_v6 = vadd.f32 %v501_v3, %v500_v2 }
 0x2cc   : > { %503 = vadd.xlane.f32.xlu1 %v502_v6  ;;  %v493_v7 = vmul.f32 %v489_v4, %v489_v4  ;;  %v494_v8 = vmul.f32 %v490_v5, %v490_v5 }
 0x2ce   : > { %v497_v9 = vadd.f32 %v494_v8, %v493_v7 }
 0x2d0   : > { %498 = vadd.xlane.f32.xlu2 %v497_v9 }
 0x33f   : > { %v504_v10 = vpop.xlane.xlu1 %503 }
 0x340   : > { %v506_v12 = vmax.f32 %v504_v10, 1e-24 }
 0x342   : > { %868 = vrsqrt.f32 %v506_v12  ;;  %vm523_vm6 = vweird.f32 %v506_v12 }
 0x343   : > { %v499_v13 = vpop.xlane.xlu2 %498 }
 0x344   : > { %v505_v14 = vmax.f32 %v499_v13, 1e-24 }
 0x346   : > { %870 = vrsqrt.f32 %v505_v14  ;;  %vm513_vm9 = vweird.f32 %v505_v14 }
 0x348   : > { %v869_v15 = vpop.eup %868 }
 0x349   : > { %v518_v16 = vmul.f32 %v869_v15, %v506_v12  ;;  %vm524_vm5 = vweird.f32 %v869_v15 }
 0x34a   : > { %vm525_vm7 = vmor %vm523_vm6, %vm524_vm5 }
 0x34b   : > { %v519_v17 = vmul.f32 %v869_v15, %v518_v16 }
 0x34c   : > { %v871_v18 = vpop.eup %870 }
 0x34d   : > { %v520_v19 = vmul.f32 0.5, %v519_v17  ;;  %v508_v20 = vmul.f32 %v871_v18, %v505_v14  ;;  %vm514_vm8 = vweird.f32 %v871_v18 }
 0x34e   : > { %vm515_vm10 = vmor %vm513_vm9, %vm514_vm8 }
 0x34f   : > { %v521_v21 = vsub.f32 1.5, %v520_v19  ;;  %v509_v22 = vmul.f32 %v871_v18, %v508_v20 }
 0x351   : > { %v522_v23 = vmul.f32 %v869_v15, %v521_v21  ;;  %v510_v24 = vmul.f32 0.5, %v509_v22 }
 0x353   : > { %v526_v25 = vsel %vm525_vm7, %v869_v15, %v522_v23  ;;  %v511_v26 = vsub.f32 1.5, %v510_v24 }
 0x354   : > { %v529_v27 = vmul.f32 %v526_v25, %v491_v58  ;;  %v530_v28 = vmul.f32 %v526_v25, %v492_v59 }
 0x355   : > { %v512_v29 = vmul.f32 %v871_v18, %v511_v26 }
 0x356   : > { %533 = vst [vmem:[#allocation8 + $0x10] sm:$0x3] %v529_v27 }
 0x357   : > { %534 = vst [vmem:[#allocation8 + $0x18] sm:$0x3] %v530_v28  ;;  %v516_v30 = vsel %vm515_vm10, %v871_v18, %v512_v29 }
 0x358   : > { %v527_v31 = vmul.f32 %v516_v30, %v489_v4  ;;  %v528_v32 = vmul.f32 %v516_v30, %v490_v5 }
 0x35a   : > { %531 = vst [vmem:[#allocation8] sm:$0xff] %v527_v31 }
 0x35b   : > { %532 = vst [vmem:[#allocation8 + $0x8] sm:$0xff] %v528_v32 }
 0x35c PF: > { %p786_p8 = scmp.ne.s32.totalorder %s990_s15, 1 }
 0x35e   : > { %538 = sbr.rel (%p786_p8) target bundleno = 1201 (0x4b1), region = 52 }
 0x363   : > { %v574_v33 = vld [vmem:[#allocation2 + $0x10] sm:$0xff]  ;;  %v576_v34 = vld [vmem:[#allocation2 + $0x18] sm:$0xff]  ;;  %v575_v35 = vld [vmem:[#allocation2] sm:$0xff]  ;;  %vm556_vm11 = vcmask 1041408   ;;  %vm612_vm12 = vcmask 130048   ;;  %vm614_vm13 = vcmask 123904  }
 0x364   : > { %v580_v36 = vpack.c.bf16 %v576_v34, %v574_v33  ;;  %v577_v37 = vld [vmem:[#allocation2 + $0x8] sm:$0xff]  ;;  %v539_v38 = vld [vmem:[#allocation8] sm:$0xff]  ;;  %v541_v39 = vld [vmem:[#allocation8 + $0x10] sm:$0x3]  ;;  %vm647_vm15 = vcmask 122880   ;;  %vm572_vm0 = vcmask 0  }
 0x365   : > { %v581_v40 = vpack.c.bf16 %v577_v37, %v575_v35  ;;  %v547_v41 = vld [vmem:[#allocation3] sm:$0xff]  ;;  %v549_v42 = vld [vmem:[#allocation3 + $0x8] sm:$0x3]  ;;  %v540_v43 = vld [vmem:[#allocation8 + $0x8] sm:$0xff]  ;;  %v578_v52 = vpack.c.bf16 %v541_v39, %v539_v38 }
 0x366   : > { %589 = vmatpush.bf16.xpose.msra.mxu0 %v580_v36  ;;  %v551_v44 = vmul.f32 %v547_v41, %v539_v38  ;;  %v553_v45 = vmul.f32 %v549_v42, %v541_v39  ;;  %v542_v46 = vld [vmem:[#allocation8 + $0x18] sm:$0x3]  ;;  %v548_v47 = vld [vmem:[#allocation3 + $0x18] sm:$0xff]  ;;  %v550_v48 = vld [vmem:[#allocation3 + $0x10] sm:$0x3]  ;;  %v1005_v36 = vmov 0.0  }
 0x367   : > { %603 = vmatpush.bf16.xpose.msra.mxu1 %v581_v40  ;;  %v552_v49 = vmul.f32 %v548_v47, %v540_v43  ;;  %v554_v50 = vmul.f32 %v550_v48, %v542_v46  ;;  %v579_v54 = vpack.c.bf16 %v542_v46, %v540_v43  ;;  %v641_v33 = vld [vmem:[%s1152_s1] sm:$0x1] }
 0x368   : > { %v557_v51 = vsel %vm556_vm11, %v553_v45, 0.0  ;;  %vm642_vm14 = vcmp.ge.s32.totalorder %v641_v33, 0 }
 0x369   : > { %v555_v53 = vadd.f32 %v552_v49, %v551_v44  ;;  %v559_v55 = vsel %vm556_vm11, %v554_v50, 0.0  ;;  %v787_v37 = vsel %vm642_vm14, 1.0, %v1005_v36 }
 0x36b   : > { %v558_v56 = vadd.f32 %v557_v51, %v555_v53 }
 0x36d   : > { %590 = vmatmul.bf16.vlgmr.msra.gmra.mxu0 %v578_v52  ;;  %v560_v57 = vadd.f32 %v559_v55, %v558_v56 }
 0x36e   : > { %604 = vmatmul.bf16.vlgmr.msra.gmra.mxu1 %v579_v54 }
 0x36f   : > { %561 = vadd.xlane.f32.xlu0 %v560_v57 }
 0x3e2   : > { %v562_v15 = vpop.xlane.xlu0 %561 }
 0x3e3   : > { %v563_v17 = vrot.slane %v562_v15, 4 }
 0x3e5   : > { %v564_v21 = vadd.f32 %v563_v17, %v562_v15 }
 0x3e7   : > { %v565_v23 = vrot.slane %v564_v21, 2 }
 0x3e9   : > { %v566_v25 = vadd.f32 %v565_v23, %v564_v21 }
 0x3ea   : > { %v591_v58 = vpop.f32.mrf.mxu0 }
 0x3eb   : > { %v605_v59 = vpop.f32.mrf.mxu1  ;;  %v567_v27 = vrot.slane %v566_v25, 1 }
 0x3ec   : > { %v606_v60 = vadd.f32 %v605_v59, %v591_v58 }
 0x3ed   : > { %v568_v29 = vadd.f32 %v567_v27, %v566_v25 }
 0x3ee   : > { %v610_v62 = vmul.f32 10.0, %v606_v60 }
 0x3ef   : > { %798 = vpush %v568_v29 }
 0x3f0   : > { %v613_v1 = vsel %vm612_vm12, %v610_v62, -inf }
 0x3f2   : > { %v593_v11 = vpop.f32.mrf.mxu0 }
 0x3f3   : > { %v607_v61 = vpop.f32.mrf.mxu1 }
 0x3f4   : > { %v608_v63 = vadd.f32 %v607_v61, %v593_v11 }
 0x3f6   : > { %v611_v0 = vmul.f32 10.0, %v608_v63 }
 0x3f8   : > { %v615_v2 = vsel %vm614_vm13, %v611_v0, -inf }
 0x3f9   : > { %v616_v3 = vmax.f32 %v613_v1, %v615_v2 }
 0x3fb   : > { %v617_v4 = vrot.slane %v616_v3, 4 }
 0x3fd   : > { %v618_v5 = vmax.f32 %v616_v3, %v617_v4 }
 0x3ff   : > { %v619_v6 = vrot.slane %v618_v5, 2 }
 0x401   : > { %v620_v7 = vmax.f32 %v618_v5, %v619_v6 }
 0x403   : > { %v621_v8 = vrot.slane %v620_v7, 1 }
 0x405   : > { %v622_v9 = vmax.f32 %v620_v7, %v621_v8 }
 0x407   : > { %v623_v10 = vsub.f32 %v610_v62, %v622_v9  ;;  %v624_v12 = vsub.f32 %v611_v0, %v622_v9 }
 0x409   : > { %v625_v13 = vmul.f32 1.442695, %v623_v10  ;;  %v627_v14 = vmul.f32 1.442695, %v624_v12 }
 0x40b   : > { %872 = vpow2.f32 %v625_v13 }
 0x40c   : > { %874 = vpow2.f32 %v627_v14 }
 0x411   : > { %v873_v16 = vpop.eup %872 }
 0x412   : > { %v875_v18 = vpop.eup %874  ;;  %v629_v19 = vsel %vm612_vm12, %v873_v16, 0.0 }
 0x413   : > { %v630_v20 = vsel %vm614_vm13, %v875_v18, 0.0 }
 0x414   : > { %v631_v22 = vadd.f32 %v630_v20, %v629_v19 }
 0x416   : > { %v632_v24 = vrot.slane %v631_v22, 4 }
 0x418   : > { %v633_v26 = vadd.f32 %v632_v24, %v631_v22 }
 0x41a   : > { %v634_v28 = vrot.slane %v633_v26, 2 }
 0x41c   : > { %v635_v30 = vadd.f32 %v634_v28, %v633_v26 }
 0x41e   : > { %v636_v31 = vrot.slane %v635_v30, 1 }
 0x420   : > { %v637_v32 = vadd.f32 %v636_v31, %v635_v30  ;;  %s799_s13 = spop %798 }
 0x421   : > { %v570_v41 = vstv %s799_s13 }
 0x422   : > { %876 = vlog2.f32 %v637_v32  ;;  %v571_v42 = vmul.f32 -10.0, %v570_v41 }
 0x424   : > { %573 = vst.msk [vmem:[#allocation9] sm:$0x1] %vm572_vm0, %v571_v42 }
 0x428   : > { %v877_v34 = vpop.eup %876 }
 0x429   : > { %v639_v35 = vmul.f32 0.6931472, %v877_v34 }
 0x42b   : > { %v640_v38 = vadd.f32 %v639_v35, %v622_v9  ;;  %v645_v43 = vld [vmem:[#allocation9] sm:$0x1] }
 0x42d   : > { %v646_v39 = vmul.f32 %v787_v37, %v640_v38 }
 0x42f   : > { %v648_v40 = vsel %vm647_vm15, %v646_v39, 0.0 }
 0x430   : > { %649 = vadd.xlane.f32.xlu0 %v648_v40 }
 0x4a3   : > { %v650_v44 = vpop.xlane.xlu0 %649 }
 0x4a4   : > { %v651_v45 = vadd.f32 %v650_v44, %v645_v43 }
 0x4a6   : > { %653 = vst.msk [vmem:[#allocation9] sm:$0x1] %vm572_vm0, %v651_v45 }
 0x4ad   : > { %v657_v46 = vld [vmem:[#allocation9] sm:$0x1] }
 0x4ae   : > { %v658_v47 = vmul.f32 0.0625, %v657_v46 }
 0x4b0   : > { %659 = vst.msk [vmem:[#allocation9] sm:$0x1] %vm572_vm0, %v658_v47 }
 0x4b1 PF: > { %p1120_p9 = scmp.eq.s32.totalorder %s770_s18, 1  ;;  %s667_s21 = sshll.u32 %s1154_s3, 4  ;;  %s668_s21 = int_to_ptr.hbm [resolvable:$true] %s667_s21 }
 0x4b2   : > { %s1006_s22 = smov [#allocation8]   ;;  %s1007_s24 = smov 256  }
 0x4b3   : > { %s665_s23 = sshll.u32 %s1006_s22, 4  ;;  %s1008_s25 = smov 16   ;;  %s666_s23 = int_to_ptr.vmem [resolvable:$true] %s665_s23 }
 0x4b4   : > { %805 = dma.vmem_to_hbm [thread:$0]  (%p1120_p9), %s666_s23, 512, %s668_s21, [#allocation7], %s1007_s24, %s1007_s24, %s1008_s25  }
 0x4b5   : > { %s1009_s26 = smov [#allocation9]   ;;  %s682_s29 = sshll.u32 %s1155_s4, 4  ;;  %s683_s29 = int_to_ptr.hbm [resolvable:$true] %s682_s29 }
 0x4b6   : > { %s680_s18 = sshll.u32 %s1009_s26, 4  ;;  %s681_s18 = int_to_ptr.vmem [resolvable:$true] %s680_s18 }
 0x4b7   : > { %807 = dma.vmem_to_hbm [thread:$0]  (%p1120_p9), %s681_s18, 16, %s683_s29, [#allocation10]  }
 0x4b8   : > { %981 = dma.done.wait (%p1120_p9), [#allocation7], 512  }
 0x4b9   : > { %983 = vsyncadd (%p1120_p9), [#allocation7], 4294966784 }
 0x4ba   : > { %985 = dma.done.wait (%p1120_p9), [#allocation10], 16  }
 0x4bb   : > { %987 = vsyncadd (%p1120_p9), [#allocation10], 4294967280 }
 0x4bc PF: > { %s18_s17 = sadd.s32 1, %s998_s17   ;;  %s1157_s15 = smov %s994_s16 }
 0x4bd   : > { %p15_p10 = scmp.ge.s32.totalorder %s18_s17, 4   ;;  %s1158_s16 = smov %s1160_s19 }
 0x4bf   :  { %17 = sbr.rel (!%p15_p10) target bundleno = 4 (0x4), region = 99 }
 0x4c4   :  { %701 = vsyncpa [#allocation6], 1 }
 0x4c5   :  { %703 = vsyncpa [#allocation6 + $0x1], 1 }
 0x4c6   :  { %704 = vsyncpa [#allocation7], 1 }
 0x4c7   :  { %706 = vsyncpa [#allocation7 + $0x1], 1 }
 0x4c8   :  { %707 = vsyncpa [#allocation10], 1 }

</bundles_post_ra>
